<compile_context>
chip_gen: v7x
topology: tpu7x:2x2x1
jax: 0.10.0
libtpu: 0.0.40
codegen_flags: <defaults>
</compile_context>

<pallas_src>
import functools
import math

import jax
import jax.numpy as jnp
from jax.experimental import pallas as pl
from jax.experimental.pallas import tpu as pltpu


_VMEM_LIMIT_BYTES = 48 * 1024 * 1024   # explicit: above v5e(16)/v6e-v7x(32) MiB defaults
_TARGET_BLOCK_BYTES = 4 * 1024 * 1024  # ~4 MiB tiles amortize the ~0.35us/step overhead
_FUSED_MAX_BYTES = 4 * 1024 * 1024     # single-call fused path threshold


def _round_up(n, m):
    return ((n + m - 1) // m) * m


def _min_tile_rows(itemsize):
    # Respect packed sublane tiling: (8,128) f32, (16,128) bf16, (32,128) 8-bit.
    if itemsize >= 4:
        return 8
    if itemsize == 2:
        return 16
    return 32


# ---------------------------------------------------------------------------
# Fused single-call path: stats + normalize from one VMEM copy of x.
# ---------------------------------------------------------------------------
def _fused_layernorm_kernel(x_ref, alpha_ref, bias_ref, o_ref, *,
                            eps, n_elems, denom):
    x = x_ref[...].astype(jnp.float32)
    total = jnp.sum(x)
    total_sq = jnp.sum(x * x)
    mean = total / n_elems
    var = jnp.maximum((total_sq - total * mean) / denom, 0.0)
    inv = 1.0 / (jnp.sqrt(var) + eps)          # eps added to std, as in reference
    scale = alpha_ref[...] * inv               # (1, ff)
    shift = bias_ref[...] - mean * scale       # (1, ff)
    o_ref[...] = (x * scale + shift).astype(o_ref.dtype)


# ---------------------------------------------------------------------------
# Tiled path pass 1: per-tile partial sum / sum-of-squares.
# Each grid step writes its own disjoint (1,8,128) output block -> fully
# parallel (megacore-friendly on v7x); partials reduced in the wrapper.
# ---------------------------------------------------------------------------
def _partial_stats_kernel(x_ref, sum_ref, sumsq_ref):
    x = x_ref[...].astype(jnp.float32)
    sum_ref[...] = jnp.zeros_like(sum_ref) + jnp.sum(x)
    sumsq_ref[...] = jnp.zeros_like(sumsq_ref) + jnp.sum(x * x)


# ---------------------------------------------------------------------------
# Tiled path pass 2: pure per-element FMA (scale/shift pre-folded outside).
# ---------------------------------------------------------------------------
def _apply_affine_kernel(x_ref, scale_ref, shift_ref, o_ref):
    x = x_ref[...].astype(jnp.float32)
    o_ref[...] = (x * scale_ref[...] + shift_ref[...]).astype(o_ref.dtype)


# ---------------------------------------------------------------------------
# Wrapper
# ---------------------------------------------------------------------------
def layer_norm_global(x, alpha, bias, eps=1e-6, *, row_tile=None,
                      donate_x=False, force_tiled=False):
    """LayerNormalization with GLOBAL mean/std and per-feature affine."""
    orig_shape = x.shape
    features = orig_shape[-1]
    rows = max(1, math.prod(orig_shape[:-1]))
    n_elems = rows * features
    denom = float(max(n_elems - 1, 1))   # torch .std(): unbiased; guard n==1

    itemsize = jnp.dtype(x.dtype).itemsize
    x2 = x.reshape(rows, features)
    alpha_f = alpha.reshape(1, features).astype(jnp.float32)
    bias_f = bias.reshape(1, features).astype(jnp.float32)

    # ---- Lane-dense layout: keep the lane axis a multiple of 128 so every
    # store is an unmasked full-width vst.
    k = 128 // math.gcd(features, 128)
    if k == 1 or rows % k == 0:
        # Fold k rows into the lane axis (demo: 32 -> 128).
        frows, ff = rows // k, features * k
        pad_cols = 0
        x_d = x2.reshape(frows, ff)
        alpha_d = jnp.tile(alpha_f, (1, k)) if k > 1 else alpha_f
        bias_d = jnp.tile(bias_f, (1, k)) if k > 1 else bias_f
    else:
        # Fold impossible: zero-pad features to the next 128 multiple. Zero
        # padding contributes 0 to sum/sumsq, so global stats stay exact.
        ff = _round_up(features, 128)
        pad_cols = ff - features
        frows = rows
        x_d = jnp.pad(x2, ((0, 0), (0, pad_cols)))
        alpha_d = jnp.pad(alpha_f, ((0, 0), (0, pad_cols)))
        bias_d = jnp.pad(bias_f, ((0, 0), (0, pad_cols)))

    dense_bytes = frows * ff * itemsize
    # Safe to alias: pass-2 (and fused) input/output index maps are identical
    # (read-then-write of the same block).
    alias = {0: 0} if donate_x else {}

    if not force_tiled and dense_bytes <= _FUSED_MAX_BYTES:
        # ---- Fused path: one HBM read of x, one write.
        kernel = functools.partial(_fused_layernorm_kernel, eps=float(eps),
                                   n_elems=float(n_elems), denom=denom)
        out_d = pl.pallas_call(
            kernel,
            out_shape=jax.ShapeDtypeStruct((frows, ff), x.dtype),
            grid=(1,),
            in_specs=[pl.BlockSpec((frows, ff), lambda i: (0, 0)),
                      pl.BlockSpec((1, ff), lambda i: (0, 0)),
                      pl.BlockSpec((1, ff), lambda i: (0, 0))],
            out_specs=pl.BlockSpec((frows, ff), lambda i: (0, 0)),
            input_output_aliases=alias,
            compiler_params=pltpu.CompilerParams(
                vmem_limit_bytes=_VMEM_LIMIT_BYTES),
        )(x_d, alpha_d, bias_d)
    else:
        # ---- Tiled two-pass path for large inputs.
        min_rows = _min_tile_rows(itemsize)
        if row_tile is not None:
            tile_rows = int(row_tile)
        else:
            t = max(1, _TARGET_BLOCK_BYTES // max(ff * itemsize, 1))
            t = max((t // min_rows) * min_rows, min_rows)
            tile_rows = min(t, _round_up(frows, min_rows))
        padded_frows = _round_up(frows, tile_rows)
        if padded_frows != frows:
            # Zero rows: exact for sum/sumsq, sliced off after normalize.
            x_d = jnp.pad(x_d, ((0, padded_frows - frows), (0, 0)))
        ntiles = padded_frows // tile_rows
        grid = (ntiles,)

        # Pass 1: parallel per-tile partial stats.
        psum, psq = pl.pallas_call(
            _partial_stats_kernel,
            out_shape=(jax.ShapeDtypeStruct((ntiles, 8, 128), jnp.float32),
                       jax.ShapeDtypeStruct((ntiles, 8, 128), jnp.float32)),
            grid=grid,
            in_specs=[pl.BlockSpec((tile_rows, ff), lambda i: (i, 0))],
            out_specs=(pl.BlockSpec((1, 8, 128), lambda i: (i, 0, 0)),
                       pl.BlockSpec((1, 8, 128), lambda i: (i, 0, 0))),
            compiler_params=pltpu.CompilerParams(
                dimension_semantics=("parallel",),
                vmem_limit_bytes=_VMEM_LIMIT_BYTES),
        )(x_d)

        x_sum = jnp.sum(psum[:, 0, 0])
        x_sumsq = jnp.sum(psq[:, 0, 0])

        # Fold stats into per-feature scale/shift ONCE (tiny (1,ff) XLA op),
        # so pass 2 is a pure FMA with no sqrt/div in the hot loop.
        mean = x_sum / float(n_elems)
        var = jnp.maximum((x_sumsq - x_sum * mean) / denom, 0.0)
        inv = 1.0 / (jnp.sqrt(var) + float(eps))
        scale = alpha_d * inv
        shift = bias_d - mean * scale

        # Pass 2: parallel row-tiled normalize.
        out_d = pl.pallas_call(
            _apply_affine_kernel,
            out_shape=jax.ShapeDtypeStruct((padded_frows, ff), x.dtype),
            grid=grid,
            in_specs=[pl.BlockSpec((tile_rows, ff), lambda i: (i, 0)),
                      pl.BlockSpec((1, ff), lambda i: (0, 0)),
                      pl.BlockSpec((1, ff), lambda i: (0, 0))],
            out_specs=pl.BlockSpec((tile_rows, ff), lambda i: (i, 0)),
            input_output_aliases=alias,
            compiler_params=pltpu.CompilerParams(
                dimension_semantics=("parallel",),
                vmem_limit_bytes=_VMEM_LIMIT_BYTES),
        )(x_d, scale, shift)

        if padded_frows != frows:
            out_d = out_d[:frows]

    if pad_cols:
        out_d = out_d[:, :features]
    return out_d.reshape(orig_shape)


def decoder_forward(x, encoder_output, src_mask, tgt_mask, layers, alpha, bias,
                    eps=1e-6, donate_x=False):
    """Mirrors Decoder.forward: apply each layer, then the global LayerNorm."""
    for layer in layers:
        x = layer(x, encoder_output, src_mask, tgt_mask)
    # donate_x=True saves the output allocation when the caller no longer
    # needs x (left off by default to keep eager callers safe).
    return layer_norm_global(x, alpha, bias, eps, donate_x=donate_x)


def _identity_decoder_layer(x, encoder_output, src_mask, tgt_mask):
    # Placeholder for externally supplied decoder blocks (see TODO above).
    return x


if __name__ == "__main__":
    key = jax.random.PRNGKey(0)
    k_x, k_enc, k_x2 = jax.random.split(key, 3)

    batch, seq, features = 2, 64, 32
    x = jax.random.normal(k_x, (batch, seq, features), dtype=jnp.float32)
    encoder_output = jax.random.normal(k_enc, (batch, seq, features),
                                       dtype=jnp.float32)
    src_mask = jnp.ones((batch, 1, 1, seq), dtype=jnp.float32)
    tgt_mask = jnp.ones((batch, 1, seq, seq), dtype=jnp.float32)

    # Deterministic parameter init, as in LayerNormalization.__init__.
    alpha = jnp.ones((features,), dtype=jnp.float32)
    bias = jnp.zeros((features,), dtype=jnp.float32)

    layers = [_identity_decoder_layer, _identity_decoder_layer]

    def ref_norm(v, a, b, eps=1e-6):
        m = jnp.mean(v)
        s = jnp.sqrt(jnp.sum((v - m) ** 2) / (v.size - 1))
        return a * (v - m) / (s + eps) + b

    # 1) Fused single-call path (lane-fold 32 -> 128), via the decoder wrapper.
    out = decoder_forward(x, encoder_output, src_mask, tgt_mask, layers,
                          alpha, bias)
    out = jax.block_until_ready(out)
    ref = ref_norm(x, alpha, bias)
    assert out.shape == (batch, seq, features)
    assert jnp.allclose(out, ref, atol=1e-4, rtol=1e-4)

    # 2) Tiled two-pass path (parallel per-tile partial stats + FMA epilogue).
    out_tiled = jax.block_until_ready(
        layer_norm_global(x, alpha, bias, force_tiled=True, row_tile=8))
    assert jnp.allclose(out_tiled, ref, atol=1e-4, rtol=1e-4)

    # 3) Feature-padding fallback (features not foldable to a 128 multiple),
    #    both fused and tiled (tiled also exercises the row-padding branch).
    f2 = 48
    x_b = jax.random.normal(k_x2, (3, 5, f2), dtype=jnp.float32)
    a_b = jnp.ones((f2,), dtype=jnp.float32)
    b_b = jnp.zeros((f2,), dtype=jnp.float32)
    ref_b = ref_norm(x_b, a_b, b_b)
    out_b = jax.block_until_ready(layer_norm_global(x_b, a_b, b_b))
    assert jnp.allclose(out_b, ref_b, atol=1e-4, rtol=1e-4)
    out_bt = jax.block_until_ready(
        layer_norm_global(x_b, a_b, b_b, force_tiled=True))
    assert jnp.allclose(out_bt, ref_b, atol=1e-4, rtol=1e-4)

    print("KERNEL_OK")
</pallas_src>

<mosaic_0001>
module attributes {stable_mosaic.version = 11 : i64} {
  func.func @_fused_layernorm_kernel(%arg0: i32, %arg1: memref<32x128xf32, #tpu.memory_space<vmem>>, %arg2: memref<1x128xf32, #tpu.memory_space<vmem>>, %arg3: memref<1x128xf32, #tpu.memory_space<vmem>>, %arg4: memref<32x128xf32, #tpu.memory_space<vmem>>) attributes {dimension_semantics = [#tpu.dimension_semantics<arbitrary>], iteration_bounds = array<i64: 1>, scalar_prefetch = 0 : i64, scratch_operands = 0 : i64, tpu.core_type = #tpu.core_type<tc>, window_params = [{pipeline_mode = #tpu.pipeline_mode<synchronous>, transform_indices = @transform_0, window_bounds = array<i64: 32, 128>}, {pipeline_mode = #tpu.pipeline_mode<synchronous>, transform_indices = @transform_1, window_bounds = array<i64: 1, 128>}, {pipeline_mode = #tpu.pipeline_mode<synchronous>, transform_indices = @transform_2, window_bounds = array<i64: 1, 128>}, {pipeline_mode = #tpu.pipeline_mode<synchronous>, transform_indices = @transform_3, window_bounds = array<i64: 32, 128>}]} {
    %c0 = arith.constant 0 : index
    %c0_0 = arith.constant 0 : index
    %0 = vector.load %arg1[%c0, %c0_0] : memref<32x128xf32, #tpu.memory_space<vmem>>, vector<32x128xf32>
    %1 = vector.shape_cast %0 : vector<32x128xf32> to vector<1x32x128xf32>
    %cst = arith.constant dense<0.000000e+00> : vector<1xf32>
    %2 = vector.multi_reduction <add>, %1, %cst [1, 2] : vector<1x32x128xf32> to vector<1xf32>
    %3 = vector.shape_cast %2 : vector<1xf32> to vector<1x1x1xf32>
    %4 = vector.extract %3[0, 0, 0] : f32 from vector<1x1x1xf32>
    %5 = arith.mulf %0, %0 : vector<32x128xf32>
    %6 = vector.shape_cast %5 : vector<32x128xf32> to vector<1x32x128xf32>
    %cst_1 = arith.constant dense<0.000000e+00> : vector<1xf32>
    %7 = vector.multi_reduction <add>, %6, %cst_1 [1, 2] : vector<1x32x128xf32> to vector<1xf32>
    %8 = vector.shape_cast %7 : vector<1xf32> to vector<1x1x1xf32>
    %9 = vector.extract %8[0, 0, 0] : f32 from vector<1x1x1xf32>
    %cst_2 = arith.constant 4.096000e+03 : f32
    %10 = arith.divf %4, %cst_2 : f32
    %11 = arith.mulf %4, %10 : f32
    %12 = arith.subf %9, %11 : f32
    %cst_3 = arith.constant 4.095000e+03 : f32
    %13 = arith.divf %12, %cst_3 : f32
    %cst_4 = arith.constant 0.000000e+00 : f32
    %14 = arith.maximumf %13, %cst_4 : f32
    %15 = math.sqrt %14 : f32
    %cst_5 = arith.constant 9.99999997E-7 : f32
    %16 = arith.addf %15, %cst_5 : f32
    %cst_6 = arith.constant 1.000000e+00 : f32
    %17 = arith.divf %cst_6, %16 : f32
    %c0_7 = arith.constant 0 : index
    %c0_8 = arith.constant 0 : index
    %18 = vector.load %arg2[%c0_7, %c0_8] : memref<1x128xf32, #tpu.memory_space<vmem>>, vector<1x128xf32>
    %19 = vector.broadcast %17 : f32 to vector<1x128xf32>
    %20 = arith.mulf %18, %19 : vector<1x128xf32>
    %c0_9 = arith.constant 0 : index
    %c0_10 = arith.constant 0 : index
    %21 = vector.load %arg3[%c0_9, %c0_10] : memref<1x128xf32, #tpu.memory_space<vmem>>, vector<1x128xf32>
    %22 = vector.broadcast %10 : f32 to vector<1x128xf32>
    %23 = arith.mulf %22, %20 : vector<1x128xf32>
    %24 = arith.subf %21, %23 : vector<1x128xf32>
    %25 = vector.broadcast %20 : vector<1x128xf32> to vector<32x128xf32>
    %26 = arith.mulf %0, %25 : vector<32x128xf32>
    %27 = vector.broadcast %24 : vector<1x128xf32> to vector<32x128xf32>
    %28 = arith.addf %26, %27 : vector<32x128xf32>
    %c0_11 = arith.constant 0 : index
    %c0_12 = arith.constant 0 : index
    %29 = vector.load %arg4[%c0_11, %c0_12] : memref<32x128xf32, #tpu.memory_space<vmem>>, vector<32x128xf32>
    tpu.vector_store %arg4[%c0_11, %c0_12], %28 {strides = array<i32>} : memref<32x128xf32, #tpu.memory_space<vmem>>, vector<32x128xf32>,
    return
  }
  func.func @transform_0(%arg0: i32) -> (i32, i32) {
    %c0_i32 = arith.constant 0 : i32
    %c0_i32_0 = arith.constant 0 : i32
    %c0_i32_1 = arith.constant 0 : i32
    return %c0_i32, %c0_i32_0 : i32, i32
  }
  func.func @transform_1(%arg0: i32) -> (i32, i32) {
    %c0_i32 = arith.constant 0 : i32
    %c0_i32_0 = arith.constant 0 : i32
    %c0_i32_1 = arith.constant 0 : i32
    return %c0_i32, %c0_i32_0 : i32, i32
  }
  func.func @transform_2(%arg0: i32) -> (i32, i32) {
    %c0_i32 = arith.constant 0 : i32
    %c0_i32_0 = arith.constant 0 : i32
    %c0_i32_1 = arith.constant 0 : i32
    return %c0_i32, %c0_i32_0 : i32, i32
  }
  func.func @transform_3(%arg0: i32) -> (i32, i32) {
    %c0_i32 = arith.constant 0 : i32
    %c0_i32_0 = arith.constant 0 : i32
    %c0_i32_1 = arith.constant 0 : i32
    return %c0_i32, %c0_i32_0 : i32, i32
  }
}

</mosaic_0001>

<bundles_post_ra>
// kernel: tpu_custom_call.1
= control target key start
LH: loop header
LB: loop body
LE: loop exit
PB: predicated region body
PF: predicated region fallthrough
CT: control target
= control target key end

     0   :  { %8 = vsyncpa [#allocation3], 0  ;;  %s289_s0 = inlined_call_operand.hbm [shape: f32[32,128], index: 0, kind: input, shape index: {}]   ;;  %s290_s1 = inlined_call_operand.vmem [shape: f32[1,128], index: 1, kind: input, shape index: {}]   ;;  %s291_s2 = inlined_call_operand.vmem [shape: f32[1,128], index: 2, kind: input, shape index: {}]   ;;  %s292_s3 = inlined_call_operand.hbm [shape: f32[32,128], index: 3, kind: output, shape index: {}]  }
   0x1   :  { %9 = vsyncpa [#allocation4], 0  ;;  %s196_s12 = smov [#allocation2]   ;;  %s148_s16 = scalar_lea.hbm %s289_s0, 512 }
   0x2   :  { %s15_s13 = sshll.u32 %s196_s12, 4  ;;  %p149_p0 = scmp.ne.s32.totalorder %s289_s0, %s148_s16  ;;  %s16_s13 = int_to_ptr.vmem [resolvable:$true] %s15_s13 }
   0x3   :  { %p152_p1 = scmp.lt.u32.totalorder %s148_s16, %s289_s0 }
   0x5   :  { %p154_p2 = pnand %p152_p1, %p149_p0 }
   0x7   :  { %157 = shalt.err (!%p154_p2)
}
   0x8   :  { %s158_s21 = scalar_lea.vmem %s16_s13, 512  ;;  %p163_p4 = scmp.lt.s32.totalorder %s16_s13, %s16_s13 }
   0x9   :  { %p159_p3 = scmp.ne.s32.totalorder %s16_s13, %s158_s21  ;;  %p164_p5 = scmp.lt.s32.totalorder %s158_s21, %s158_s21 }
   0xb   :  { %p165_p6 = por %p164_p5, %p163_p4 }
   0xd   :  { %p166_p7 = pnand %p165_p6, %p159_p3 }
   0xf   :  { %169 = shalt.err (!%p166_p7)
}
  0x10   :  { %s197_s22 = smov 128   ;;  %s198_s23 = smov 8  }
  0x11   :  { %21 = dma.hbm_to_vmem [thread:$0]  %s289_s0, 512, %s16_s13, [#allocation3], %s197_s22, %s197_s22, %s198_s23  }
  0x12   :  { %192 = dma.done.wait [#allocation3], 512  }
  0x13   :  { %193 = vsyncadd [#allocation3], 4294966784  ;;  %v236_v0 = vld [vmem:[#allocation2] sm:$0xff]  ;;  %v238_v1 = vld [vmem:[#allocation2 + $0x8] sm:$0xff]  ;;  %s199_s4 = smov 0.0   ;;  %v91_v36 = vlaneseq  ;;  %s200_s13 = smov [#allocation5]  }
  0x14   :  { %v240_v2 = vld [vmem:[#allocation2 + $0x10] sm:$0xff]  ;;  %v33_v3 = vadd.f32 %v238_v1, %v236_v0  ;;  %v45_v4 = vmul.f32 %v236_v0, %v236_v0  ;;  %v46_v5 = vmul.f32 %v238_v1, %v238_v1  ;;  %v250_v7 = vld [vmem:[#allocation2 + $0x18] sm:$0xff]  ;;  %v83_v38 = vld [vmem:[%s290_s1] sm:$0x1]  ;;  %s119_s14 = sshll.u32 %s200_s13, 4  ;;  %s120_s14 = int_to_ptr.vmem [resolvable:$true] %s119_s14 }
  0x15   :  { %v47_v6 = vmul.f32 %v240_v2, %v240_v2  ;;  %v48_v9 = vmul.f32 %v250_v7, %v250_v7  ;;  %v92_v37 = vshrl.u32 %v91_v36, 7  ;;  %v86_v42 = vld [vmem:[%s291_s2] sm:$0x1]  ;;  %s170_s1 = scalar_lea.vmem %s120_s14, 512  ;;  %p175_p9 = scmp.lt.s32.totalorder %s120_s14, %s120_s14 }
  0x16   :  { %v34_v8 = vadd.f32 %v33_v3, %v240_v2  ;;  %v49_v10 = vadd.f32 %v46_v5, %v45_v4  ;;  %p171_p8 = scmp.ne.s32.totalorder %s120_s14, %s170_s1  ;;  %p176_p10 = scmp.lt.s32.totalorder %s170_s1, %s170_s1 }
  0x17   :  { %v93_v39 = vsub.s32 0, %v92_v37 }
  0x18   :  { %v35_v11 = vadd.f32 %v34_v8, %v250_v7  ;;  %v50_v12 = vadd.f32 %v49_v10, %v47_v6  ;;  %p177_p11 = por %p176_p10, %p175_p9 }
  0x1a   :  { %36 = vadd.xlane.f32.xlu0 %v35_v11  ;;  %v51_v13 = vadd.f32 %v50_v12, %v48_v9  ;;  %p178_p12 = pnand %p177_p11, %p171_p8 }
  0x1e   :  { %52 = vadd.xlane.f32.xlu0 %v51_v13 }
  0xa7   :  { %v37_v14 = vpop.xlane.xlu0 %36 }
  0xa8   :  { %v38_v15 = vrot.slane %v37_v14, 4 }
  0xaa   :  { %v39_v16 = vadd.f32 %v38_v15, %v37_v14 }
  0xab   :  { %v53_v17 = vpop.xlane.xlu0 %52 }
  0xac   :  { %v40_v18 = vrot.slane %v39_v16, 2  ;;  %v54_v19 = vrot.slane %v53_v17, 4 }
  0xae   :  { %v55_v20 = vadd.f32 %v54_v19, %v53_v17  ;;  %v41_v21 = vadd.f32 %v40_v18, %v39_v16 }
  0xb0   :  { %v56_v22 = vrot.slane %v55_v20, 2  ;;  %v42_v23 = vrot.slane %v41_v21, 1 }
  0xb2   :  { %v57_v24 = vadd.f32 %v56_v22, %v55_v20  ;;  %v43_v25 = vadd.f32 %v42_v23, %v41_v21 }
  0xb4   :  { %131 = vpush %v43_v25  ;;  %v58_v26 = vrot.slane %v57_v24, 1 }
  0xb6   :  { %v59_v27 = vadd.f32 %v58_v26, %v57_v24 }
  0xb8   :  { %133 = vpush %v59_v27 }
  0xe5   :  { %s256_s0 = spop %131 }
  0xe6   :  { %s63_s26 = smul.f32 0.00024414063, %s256_s0 }
  0xe8   :  { %s64_s27 = smul.f32 %s256_s0, %s63_s26  ;;  %v87_v43 = vstv %s63_s26 }
  0xe9   :  { %s134_s28 = spop %133 }
  0xea   :  { %s65_s29 = ssub.f32 %s134_s28, %s64_s27 }
  0xec   :  { %s68_s30 = smul.f32 0.00024420026, %s65_s29 }
  0xee   :  { %s69_s5 = smax.f32 %s199_s4, %s68_s30 }
  0xef   :  { %v70_v28 = vstv %s69_s5 }
  0xf0   :  { %144 = vrsqrt.f32 %v70_v28  ;;  %vm73_vm0 = vcmp.eq.f32.partialorder %v70_v28, inf  ;;  %v76_v31 = vand.u32 2147483648, %v70_v28  ;;  %vm75_vm1 = vcmp.eq.f32.partialorder %v70_v28, 0.0 }
  0xfa   :  { %v145_v29 = vpop.eup %144 }
  0xfb   :  { %v72_v30 = vmul.f32 %v145_v29, %v70_v28 }
  0xfd   :  { %v74_v32 = vsel %vm73_vm0, %v70_v28, %v72_v30 }
  0xfe   :  { %v77_v33 = vsel %vm75_vm1, %v76_v31, %v74_v32 }
  0xff   :  { %135 = vpush %v77_v33 }
 0x130   :  { %s136_s6 = spop %135 }
 0x131   :  { %s79_s7 = sadd.f32 1e-06, %s136_s6 }
 0x133   :  { %v80_v34 = vstv %s79_s7 }
 0x134   :  { %146 = vrcp.f32 %v80_v34 }
 0x13e   :  { %v147_v35 = vpop.eup %146 }
 0x13f   :  { %137 = vpush %v147_v35 }
 0x170   :  { %s138_s10 = spop %137 }
 0x171   :  { %v84_v40 = vstv %s138_s10 }
 0x172   :  { %v85_v41 = vmul.f32 %v84_v40, %v83_v38 }
 0x174   :  { %v88_v44 = vmul.f32 %v87_v43, %v85_v41  ;;  %v94_v45 = vrot.slane %v85_v41, %v93_v39 }
 0x176   :  { %v89_v46 = vsub.f32 %v86_v42, %v88_v44  ;;  %v96_v47 = vmul.f32 %v94_v45, %v236_v0  ;;  %v97_v48 = vmul.f32 %v94_v45, %v238_v1  ;;  %v98_v49 = vmul.f32 %v94_v45, %v240_v2 }
 0x177   :  { %v99_v50 = vmul.f32 %v94_v45, %v250_v7 }
 0x178   :  { %v104_v51 = vrot.slane %v89_v46, %v93_v39 }
 0x17a   :  { %v106_v52 = vadd.f32 %v104_v51, %v96_v47  ;;  %v107_v53 = vadd.f32 %v104_v51, %v97_v48  ;;  %v108_v54 = vadd.f32 %v104_v51, %v98_v49  ;;  %v109_v55 = vadd.f32 %v104_v51, %v99_v50 }
 0x17c   :  { %110 = vst [vmem:[#allocation5] sm:$0xff] %v106_v52  ;;  %111 = vst [vmem:[#allocation5 + $0x8] sm:$0xff] %v107_v53 }
 0x17d   :  { %112 = vst [vmem:[#allocation5 + $0x10] sm:$0xff] %v108_v54  ;;  %113 = vst [vmem:[#allocation5 + $0x18] sm:$0xff] %v109_v55 }
 0x17e   :  { %181 = shalt.err (!%p178_p12)
}
 0x17f   :  { %s182_s16 = scalar_lea.hbm %s292_s3, 512 }
 0x180   :  { %p183_p13 = scmp.ne.s32.totalorder %s292_s3, %s182_s16  ;;  %p186_p0 = scmp.lt.u32.totalorder %s182_s16, %s292_s3 }
 0x182   :  { %p188_p1 = pnand %p186_p0, %p183_p13 }
 0x184   :  { %191 = shalt.err (!%p188_p1)
}
 0x185   :  { %125 = dma.vmem_to_hbm [thread:$0]  %s120_s14, 512, %s292_s3, [#allocation4], %s197_s22, %s197_s22, %s198_s23  }
 0x186   :  { %194 = dma.done.wait [#allocation4], 512  }
 0x187   :  { %195 = vsyncadd [#allocation4], 4294966784 }
 0x188   :  { %129 = vsyncpa [#allocation3], 1 }
 0x189   :  { %130 = vsyncpa [#allocation4], 1 }

</bundles_post_ra>
